<compile_context>
chip_gen: v5e
topology: v5e:2x2
jax: 0.10.0
libtpu: 0.0.40
codegen_flags: <defaults>
</compile_context>

<pallas_src>
import math

import jax
import jax.numpy as jnp
from jax.experimental import pallas as pl
from jax.experimental.pallas import tpu as pltpu

_LANE = 128
_SUB = 8


def _round_up(x, m):
    return (x + m - 1) // m * m


def _one_hot_kernel(x_ref, o_ref):
    # x_ref: (TN, 1, TS)  int32 labels
    # o_ref: (TN, TD, TS) float32 one-hot slab for channels [d0, d0 + TD)
    td = o_ref.shape[1]
    d0 = pl.program_id(1) * td                                   # depth-block offset
    x = x_ref[...]                                               # (TN, 1, TS)
    ch = jax.lax.broadcasted_iota(jnp.int32, (1, td, 1), 1) + d0 # tiny iota
    o_ref[...] = (x == ch).astype(jnp.float32)                   # VPU bcast compare


def _vmem_plan():
    """Return (pipeline_budget_bytes, vmem_limit_bytes), generation aware."""
    cap = None
    try:
        cap = getattr(pltpu.get_tpu_info(), "vmem_capacity_bytes", None)
    except Exception:
        cap = None
    if cap is None:
        cap = 128 << 20
    if cap <= (64 << 20):            # v7x-class: 64 MiB physical VMEM per TC
        return 20 << 20, 36 << 20
    return 40 << 20, 64 << 20        # v5e / v6e: 128 MiB physical VMEM


def one_hot_forward(x_in, depth):
    """Pallas equivalent of One_Hot(depth).forward(x_in)."""
    n = x_in.shape[0]
    spatial = x_in.shape[1:]
    s = math.prod(spatial) if spatial else 1

    x3 = x_in.reshape(n, 1, s)
    if x3.dtype != jnp.int32:
        x3 = x3.astype(jnp.int32)

    budget, vmem_limit = _vmem_plan()

    # ---- depth tiling: keep >=512 lanes affordable even for huge depth ----
    ts_floor = min(_round_up(s, _LANE), 512)
    td_pad_max = budget // (2 * 4 * ts_floor) - _SUB
    td_pad_max = max(_SUB, (td_pad_max // _SUB) * _SUB)
    if _round_up(depth, _SUB) <= td_pad_max:
        td = depth                                   # full channel dim per block
    else:
        td = td_pad_max                              # multiple of 8, < depth

    # ---- lane tiling with sublane-padding-aware VMEM accounting ----
    # Per padded lane column, per grid step, both double-buffers, TN = 1:
    #   label block (TN,1,TS) int32: size-1 sublane dim pads to 8 -> 8*4 B
    #   output block (TN,TD,TS) f32 : TD pads to multiple of 8    -> rup(TD,8)*4 B
    col_bytes = 2 * 4 * (_SUB + _round_up(td, _SUB))
    ts_cap = max(_LANE, (budget // col_bytes) // _LANE * _LANE)

    if s <= ts_cap:
        # Whole spatial axis in one lane tile (full dim -> no 128 constraint).
        ts = s
        per_batch = col_bytes * _round_up(s, _LANE)
        tn = max(1, min(n, budget // per_batch))
        if n >= 2:
            tn = max(1, min(tn, n // 2))   # >=2 parallel steps for v7x megacore
        while n % tn != 0:
            tn -= 1
    else:
        # Tile S lane-densely; ragged tail is masked by Pallas on writeback.
        ts = ts_cap
        tn = 1

    grid = (n // tn, pl.cdiv(depth, td), pl.cdiv(s, ts))

    out = pl.pallas_call(
        _one_hot_kernel,
        out_shape=jax.ShapeDtypeStruct((n, depth, s), jnp.float32),
        grid=grid,
        in_specs=[pl.BlockSpec((tn, 1, ts), lambda i, d, j: (i, 0, j))],
        out_specs=pl.BlockSpec((tn, td, ts), lambda i, d, j: (i, d, j)),
        compiler_params=pltpu.CompilerParams(
            dimension_semantics=("parallel", "parallel", "parallel"),
            vmem_limit_bytes=vmem_limit),
    )(x3)

    # back to (N, depth, *spatial) == permute(0, -1, 1..n_dim-1)
    out = out.reshape((n, depth) + spatial)
    # torch .squeeze(dim=2): only squeezes if that dim has size 1
    if out.ndim > 2 and out.shape[2] == 1:
        out = jnp.squeeze(out, axis=2)
    return out


def _reference(x_in, depth):
    # Pure-JAX emulation of the PyTorch forward for verification.
    n_dim = x_in.ndim
    oh = jax.nn.one_hot(x_in.reshape(-1).astype(jnp.int32), depth,
                        dtype=jnp.float32)
    oh = oh.reshape(x_in.shape + (depth,))
    oh = jnp.transpose(oh, (0, n_dim) + tuple(range(1, n_dim)))
    if oh.ndim > 2 and oh.shape[2] == 1:
        oh = jnp.squeeze(oh, axis=2)
    return oh


if __name__ == "__main__":
    depth = 4
    key = jax.random.PRNGKey(0)
    # typical segmentation label map: (N, 1, H, W) integer class ids
    x = jax.random.randint(key, (2, 1, 16, 16), 0, depth, dtype=jnp.int32)

    out = one_hot_forward(x, depth)
    out = jax.block_until_ready(out)

    ref = _reference(x, depth)
    assert out.shape == (2, depth, 16, 16), out.shape
    assert out.dtype == jnp.float32, out.dtype
    assert jnp.array_equal(out, ref), "mismatch vs reference one-hot"

    print("KERNEL_OK")
</pallas_src>

<mosaic_0001>
module attributes {stable_mosaic.version = 11 : i64} {
  func.func @_one_hot_kernel(%arg0: i32, %arg1: i32, %arg2: i32, %arg3: memref<1x1x256xi32, #tpu.memory_space<vmem>>, %arg4: memref<1x4x256xf32, #tpu.memory_space<vmem>>) attributes {dimension_semantics = [#tpu.dimension_semantics<parallel>, #tpu.dimension_semantics<parallel>, #tpu.dimension_semantics<parallel>], iteration_bounds = array<i64: 2, 1, 1>, scalar_prefetch = 0 : i64, scratch_operands = 0 : i64, tpu.core_type = #tpu.core_type<tc>, window_params = [{transform_indices = @transform_0, window_bounds = array<i64: 1, 1, 256>}, {transform_indices = @transform_1, window_bounds = array<i64: 1, 4, 256>}]} {
    %c4_i32 = arith.constant 4 : i32
    %0 = arith.muli %arg1, %c4_i32 : i32
    %c0 = arith.constant 0 : index
    %c0_0 = arith.constant 0 : index
    %c0_1 = arith.constant 0 : index
    %1 = vector.load %arg3[%c0, %c0_0, %c0_1] : memref<1x1x256xi32, #tpu.memory_space<vmem>>, vector<1x1x256xi32>
    %2 = tpu.iota {dimensions = array<i32: 1>} : vector<1x4x1xi32>
    %3 = vector.broadcast %0 : i32 to vector<1x4x1xi32>
    %4 = arith.addi %2, %3 : vector<1x4x1xi32>
    %5 = vector.broadcast %1 : vector<1x1x256xi32> to vector<1x4x256xi32>
    %6 = vector.broadcast %4 : vector<1x4x1xi32> to vector<1x4x256xi32>
    %7 = arith.cmpi eq, %5, %6 : vector<1x4x256xi32>
    %8 = arith.extui %7 : vector<1x4x256xi1> to vector<1x4x256xi32>
    %9 = arith.sitofp %8 : vector<1x4x256xi32> to vector<1x4x256xf32>
    %c0_2 = arith.constant 0 : index
    %c0_3 = arith.constant 0 : index
    %c0_4 = arith.constant 0 : index
    %10 = vector.load %arg4[%c0_2, %c0_3, %c0_4] : memref<1x4x256xf32, #tpu.memory_space<vmem>>, vector<1x4x256xf32>
    tpu.vector_store %arg4[%c0_2, %c0_3, %c0_4], %9 {strides = array<i32>} : memref<1x4x256xf32, #tpu.memory_space<vmem>>, vector<1x4x256xf32>,
    return
  }
  func.func @transform_0(%arg0: i32, %arg1: i32, %arg2: i32) -> (i32, i32, i32) {
    %c0_i32 = arith.constant 0 : i32
    %c0_i32_0 = arith.constant 0 : i32
    return %arg0, %c0_i32, %arg2 : i32, i32, i32
  }
  func.func @transform_1(%arg0: i32, %arg1: i32, %arg2: i32) -> (i32, i32, i32) {
    %c0_i32 = arith.constant 0 : i32
    return %arg0, %arg1, %arg2 : i32, i32, i32
  }
}

</mosaic_0001>

<bundles_post_ra>
// kernel: tpu_custom_call.1
= control target key start
LH: loop header
LB: loop body
LE: loop exit
PB: predicated region body
PF: predicated region fallthrough
CT: control target
= control target key end

     0   :  { %6 = vsyncpa [#allocation3], 0  ;;  %s619_s0 = inlined_call_operand.hbm [shape: s32[2,1,256], index: 0, kind: input, shape index: {}]   ;;  %s620_s1 = inlined_call_operand.hbm [shape: f32[2,4,256], index: 1, kind: output, shape index: {}]  }
   0x1   :  { %8 = vsyncpa [#allocation3 + $0x1], 0 }
   0x2   :  { %9 = vsyncpa [#allocation4], 0 }
   0x3   :  { %11 = vsyncpa [#allocation4 + $0x1], 0  ;;  %s498_s6 = smov 0   ;;  %s500_s7 = smov 0  }
   0x4   :  { %s502_s8 = smov 0   ;;  %s504_s9 = smov 0  }
   0x5   :  { %s506_s10 = smov 0   ;;  %s508_s11 = smov 0  }
   0x6 LB: > { %s293_s12 = sadd.s32 4294967295, %s485_s11   ;;  %s294_s13 = sadd.s32 4294967294, %s485_s11   ;;  %s485_s11 = sphi %s508_s11, %s17_s11   ;;  %s481_s10 = sphi %s506_s10, %s629_s10   ;;  %s477_s9 = sphi %s504_s9, %s628_s9   ;;  %s473_s8 = sphi %s502_s8, %s627_s8   ;;  %s469_s7 = sphi %s500_s7, %s626_s7   ;;  %s465_s6 = sphi %s498_s6, %s625_s6  }
   0x7   : > { %s36_s14 = sadd.s32 1, %s481_s10  ;;  %s45_s15 = sadd.s32 1, %s473_s8 }
   0x8   : > { %p38_p0 = scmp.ge.s32.totalorder %s36_s14, 2  ;;  %p52_p1 = scmp.ne.s32.totalorder %s473_s8, %s469_s7 }
   0x9   : > { %p53_p2 = scmp.eq.s32.totalorder %s485_s11, 0  ;;  %p58_p3 = scmp.ne.s32.totalorder %s469_s7, %s465_s6 }
   0xa   : > { %s631_s14 = smov (%p38_p0, %s36_s14), 0  ;;  %p59_p5 = scmp.eq.s32.totalorder %s293_s12, 0 }
   0xb   : > { %p539_p4 = por %p53_p2, %p52_p1  ;;  %s40_s17 = ssub.s32 %s481_s10, %s631_s14 }
   0xc   : > { %p86_p6 = scmp.eq.s32.totalorder %s293_s12, 1  ;;  %p43_p7 = scmp.eq.s32.totalorder %s40_s17, 0 }
   0xd   : > { %p545_p8 = por %p59_p5, %p58_p3  ;;  %p92_p10 = scmp.eq.s32.totalorder %s294_s13, 1 }
   0xe   : > { %p549_p9 = por %p86_p6, %p52_p1  ;;  %p296_p12 = scmp.ge.s32.totalorder %s485_s11, 2 }
   0xf   : > { %s554_s20 = scalar_select %p43_p7, %s473_s8, %s45_s15  }
  0x10   : > { %p556_p11 = por %p92_p10, %p58_p3  ;;  %p322_p13 = scmp.lt.s32.totalorder %s485_s11, 2 }
  0x11   : > { %s112_s22 = sand.u32 1, %s473_s8   ;;  %s298_s24 = sshll.u32 %s481_s10, 1 }
  0x12   : > { %s297_s23 = sshll.u32 %s112_s22, 1  ;;  %s122_s27 = scalar_lea.hbm %s619_s0, %s298_s24 }
  0x13   : > { %s116_s28 = scalar_lea.vmem [#allocation2], %s297_s23  ;;  %s124_s30 = sshll.u32 %s122_s27, 4  ;;  %s125_s30 = int_to_ptr.hbm [resolvable:$true] %s124_s30 }
  0x14   : > { %s126_s29 = sshll.u32 %s116_s28, 4  ;;  %p315_p0 = pnand %p322_p13, %p539_p4  ;;  %s127_s29 = int_to_ptr.vmem [resolvable:$true] %s126_s29 }
  0x15   : > { %p299_p1 = scmp.ge.s32.totalorder %s485_s11, 1  ;;  %p131_p2 = scmp.lt.s32.totalorder %s485_s11, 3 }
  0x16   : > { %s113_s2 = scalar_lea.sflag [#allocation3], %s112_s22 }
  0x17   : > { %317 = dma.hbm_to_vmem [thread:$0]  (!%p315_p0), %s125_s30, 32, %s127_s29, %s113_s2  }
  0x18   : > { %p132_p3 = pnand %p299_p1, %p131_p2 }
  0x19   : > { %s572_s3 = sand.u32 (!%p132_p3), 1, %s469_s7  }
  0x1a   : > { %135 = sbr.rel (%p132_p3) target bundleno = 47 (0x2f), region = 24  ;;  %s300_s4 = sshll.u32 (!%p132_p3), %s572_s3, 1 }
  0x1b   : > { %s138_s5 = scalar_lea.sflag (!%p132_p3), [#allocation3], %s572_s3  ;;  %s141_s12 = scalar_lea.vmem (!%p132_p3), [#allocation2], %s300_s4 }
  0x1f   : > { %456 = dma.done.wait (%p545_p8), %s138_s5, 32  }
  0x20   : > { %458 = vsyncadd (%p545_p8), %s138_s5, 4294967264  ;;  %v165_v0 = vlaneseq  ;;  %s301_s13 = sshll.u32 %s572_s3, 3  ;;  %s309_s15 = sshll.u32 %s477_s9, 3  ;;  %v164_v2 = vld [vmem:[%s141_s12] sm:$0x3]  ;;  %v487_v5 = vmov 0.0  }
  0x21   : > { %s200_s22 = scalar_lea.hbm %s620_s1, %s309_s15  ;;  %v169_v3 = vperm.slane %v164_v2, 0  ;;  %v170_v4 = vperm.slane %v164_v2, 1  ;;  %s160_s23 = scalar_lea.vmem [#allocation5], %s301_s13  ;;  %vm180_vm2 = vcmask 1043456  }
  0x22   : > { %v166_v1 = vshrl.u32 %v165_v0, 7  ;;  %s202_s24 = sshll.u32 %s160_s23, 4  ;;  %s204_s18 = sshll.u32 %s200_s22, 4  ;;  %s203_s24 = int_to_ptr.vmem [resolvable:$true] %s202_s24  ;;  %s205_s18 = int_to_ptr.hbm [resolvable:$true] %s204_s18 }
  0x23   : > { %s185_s9 = scalar_lea.sflag [#allocation4], %s572_s3  ;;  %s417_s25 = sshra.s32 %s205_s18, 4  ;;  %s418_s25 = int_to_ptr.hbm [resolvable:$true] %s417_s25 }
  0x24   : > { %vm171_vm0 = vcmp.eq.s32.totalorder %v169_v3, %v166_v1  ;;  %vm172_vm1 = vcmp.eq.s32.totalorder %v170_v4, %v166_v1  ;;  %s419_s26 = scalar_lea.hbm %s418_s25, 8  ;;  %s423_s29 = scalar_lea.hbm %s620_s1, 16 }
  0x25   : > { %v302_v6 = vsel %vm171_vm0, 1.0, %v487_v5  ;;  %v303_v7 = vsel %vm172_vm1, 1.0, %v487_v5  ;;  %p420_p4 = scmp.ne.s32.totalorder %s418_s25, %s419_s26  ;;  %p424_p7 = scmp.lt.s32.totalorder %s418_s25, %s620_s1 }
  0x26   : > { %v179_v8 = vrot.slane %v303_v7, 4  ;;  %p425_p8 = scmp.lt.s32.totalorder %s423_s29, %s419_s26 }
  0x27   : > { %p421_p5 = pnand %p420_p4, %p549_p9 }
  0x28   : > { %v181_v9 = vsel %vm180_vm2, %v302_v6, %v179_v8  ;;  %p426_p10 = por %p425_p8, %p424_p7 }
  0x29   : > { %183 = vst [vmem:[%s160_s23] sm:$0xff] %v181_v9  ;;  %p422_p6 = pneg %p421_p5 }
  0x2b   : > { %p427_p13 = pnand %p426_p10, %p422_p6 }
  0x2d   : > { %430 = shalt.err (!%p427_p13)
}
  0x2e   : > { %312 = dma.vmem_to_hbm [thread:$0]  (%p549_p9), %s203_s24, 128, %s205_s18, %s185_s9  }
  0x2f PF: > { %s216_s3 = sand.u32 1, %s465_s6   ;;  %p319_p0 = pnand %p296_p12, %p556_p11 }
  0x30   : > { %s217_s4 = scalar_lea.sflag [#allocation4], %s216_s3 }
  0x31   : > { %p320_p1 = pneg %p319_p0 }
  0x33   : > { %460 = dma.done.wait (%p320_p1), %s217_s4, 128  }
  0x34   : > { %462 = vsyncadd (%p320_p1), %s217_s4, 4294967168  ;;  %s17_s11 = sadd.s32 1, %s485_s11   ;;  %s625_s6 = smov %s469_s7 }
  0x35   : > { %p14_p2 = scmp.ge.s32.totalorder %s17_s11, 4   ;;  %s626_s7 = smov %s473_s8 }
  0x36   : > { %s627_s8 = smov %s554_s20  ;;  %s628_s9 = smov %s481_s10 }
  0x37   : > { %s629_s10 = smov %s631_s14  ;;  %16 = sbr.rel (!%p14_p2) target bundleno = 6 (0x6), region = 69 }
  0x3c   :  { %223 = vsyncpa [#allocation3], 1 }
  0x3d   :  { %225 = vsyncpa [#allocation3 + $0x1], 1 }
  0x3e   :  { %226 = vsyncpa [#allocation4], 1 }
  0x3f   :  { %228 = vsyncpa [#allocation4 + $0x1], 1 }

</bundles_post_ra>
